<compile_context>
chip_gen: v6e
topology: v6e:2x2x1
jax: 0.10.0
libtpu: 0.0.40
codegen_flags: <defaults>
</compile_context>

<pallas_src>
import jax
import jax.numpy as jnp
from jax.experimental import pallas as pl
from jax.experimental.pallas import tpu as pltpu


def _round_up(x, m):
    return (x + m - 1) // m * m


def _pad_dim(d):
    # 128-lane alignment; 256 when the dim already exceeds 128 so the v6e/v7x
    # 256-wide MXU passes run full width (v5e's 4x128^2 MXU is fine either way).
    return _round_up(d, 256) if d > 128 else _round_up(d, 128)


def _default_vmem_limit_bytes():
    # ~3/4 of physical VMEM, capped at 100 MiB (≈96 MiB on v5e/v6e's 128 MiB,
    # ≈48 MiB on v7x's 64 MiB).  Fallback is safe on every generation.
    try:
        phys = int(pltpu.get_tpu_info().vmem_capacity_bytes)
        return int(min(phys * 3 // 4, 100 << 20))
    except Exception:
        return 48 << 20


def _input_attention_kernel(ce_ref, inv_len_ref, n_pad_ref, xe_ref,
                            w1_ref, b1_ref, hpad_ref, w2_ref, b2_ref,
                            out_ref, acc_ref):
    # ce_ref:      (tb, tl, Ep) bf16  context embeddings, one L-chunk
    # inv_len_ref: (tb, 1)      f32   1 / true_len (guarded >= 1)
    # n_pad_ref:   (tb, 1)      f32   number of padding positions in Lp
    # xe_ref:      (tb, Ep)     bf16  word embeddings
    # w1_ref:      (Ep, Hp)     bf16  ann[1].weight.T (zero-padded, resident)
    # b1_ref:      (1, Hp)      f32
    # hpad_ref:    (1, Hp)      f32   ReLU(emb[pad] @ W1 + b1) pad-row correction
    # w2_ref:      (Hp, Ep)     bf16  a_linear.weight.T (zero-padded, resident)
    # b2_ref:      (1, Ep)      f32
    # out_ref:     (tb, Ep)     f32
    # acc_ref:     (tb, Hp)     f32   running sum over L of ReLU(ce @ W1 + b1)
    l = pl.program_id(1)
    tb, tl, e_pad = ce_ref.shape

    @pl.when(l == 0)
    def _init():
        acc_ref[...] = jnp.zeros_like(acc_ref)

    # ann: (Dropout = identity in eval) + Linear + ReLU.  bf16 MXU, f32 acc.
    ce = ce_ref[...].reshape(tb * tl, e_pad)            # tl % 8 == 0 -> trivial merge
    h = jnp.dot(ce, w1_ref[...], preferred_element_type=jnp.float32)
    h = jnp.maximum(h + b1_ref[...], 0.0)               # (tb*tl, Hp) f32
    acc_ref[...] += h.reshape(tb, tl, -1).sum(axis=1)   # chunked L reduction

    @pl.when(l == pl.num_programs(1) - 1)
    def _finalize():
        # Masked mean over L: every masked position is exactly the padding_idx
        # token, so subtracting n_pad copies of the constant pad-row h is exact.
        pooled = (acc_ref[...] - n_pad_ref[...] * hpad_ref[...]) * inv_len_ref[...]
        # a_linear in bf16 on the MXU, f32 accumulate + f32 epilogue.
        logits = jnp.dot(pooled.astype(jnp.bfloat16), w2_ref[...],
                         preferred_element_type=jnp.float32) + b2_ref[...]
        gate = jax.nn.sigmoid(logits)
        out_ref[...] = (gate * xe_ref[...].astype(jnp.float32)).astype(out_ref.dtype)


def prepare_input_attention_params(emb_table, padding_idx, w1, b1, w2, b2):
    """One-time preprocessing.  Call once at init and cache the result."""
    _, E = emb_table.shape
    H = w1.shape[0]
    e_pad = _pad_dim(E)
    h_pad = _pad_dim(H)

    emb_p = jnp.pad(emb_table.astype(jnp.bfloat16), ((0, 0), (0, e_pad - E)))
    w1_t = jnp.zeros((e_pad, h_pad), jnp.bfloat16).at[:E, :H].set(
        w1.T.astype(jnp.bfloat16))
    b1_r = jnp.zeros((1, h_pad), jnp.float32).at[0, :H].set(b1.astype(jnp.float32))
    w2_t = jnp.zeros((h_pad, e_pad), jnp.bfloat16).at[:H, :E].set(
        w2.T.astype(jnp.bfloat16))
    b2_r = jnp.zeros((1, e_pad), jnp.float32).at[0, :E].set(b2.astype(jnp.float32))

    # Constant pad-row hidden state, computed with the same bf16 operands /
    # f32 accumulation as the kernel so the correction cancels exactly.
    pad_row = emb_p[padding_idx][None, :]                         # (1, Ep) bf16
    hpad_r = jnp.maximum(
        jnp.dot(pad_row, w1_t, preferred_element_type=jnp.float32) + b1_r, 0.0)

    return dict(padding_idx=padding_idx, E=E, H=H, e_pad=e_pad, h_pad=h_pad,
                emb_p=emb_p, w1_t=w1_t, b1_r=b1_r, w2_t=w2_t, b2_r=b2_r,
                hpad_r=hpad_r)


def input_attention_forward(word, context, params, *, tb=256, l_chunk=64):
    """word: (B, 1) int32, context: (B, L) int32.  Returns (B, E) f32."""
    B, L = context.shape
    padding_idx = params["padding_idx"]
    E, e_pad, h_pad = params["E"], params["e_pad"], params["h_pad"]
    emb_p = params["emb_p"]

    # ---- batch / sequence tiling ----
    # tb >= 128 amortizes per-grid-step overhead and keeps the MXU M-dim large;
    # it is clamped so tiny batches don't get inflated.  On v7x pick tb so the
    # batch grid keeps both TensorCores busy (>= ~8 steps for real batches).
    tb_eff = min(tb, _round_up(B, 8))
    b_pad = _round_up(B, tb_eff)
    l_pad = _round_up(L, 8)
    if l_pad <= l_chunk:
        tl = l_pad
    else:
        tl = _round_up(l_chunk, 8)
        l_pad = _round_up(L, tl)
    n_l = l_pad // tl

    # ---- pad token-id inputs (extra rows / cols are padding tokens) ----
    ctx_p = jnp.full((b_pad, l_pad), padding_idx, dtype=context.dtype)
    ctx_p = ctx_p.at[:B, :L].set(context)
    word_p = jnp.full((b_pad,), padding_idx, dtype=word.dtype)
    word_p = word_p.at[:B].set(word[:, 0])

    # ---- embedding gathers (plain JAX, bf16 slabs from the cached table) ----
    # TODO(synk): fuse this gather into the kernel (scalar-prefetched ids +
    # manual DMA row gather from an HBM-resident table) once e_pad*2 >= 512 B.
    xe = jnp.take(emb_p, word_p, axis=0)                         # (Bp, Ep) bf16
    ce = jnp.take(emb_p, ctx_p.reshape(-1), axis=0)              # (Bp*Lp, Ep) bf16
    ce = ce.reshape(b_pad, l_pad, e_pad)

    # ---- per-example scalars replacing the old (tb, L, 1) mask block ----
    lengths = jnp.sum((ctx_p != padding_idx).astype(jnp.float32), axis=1,
                      keepdims=True)                             # (Bp, 1)
    inv_len = 1.0 / jnp.maximum(lengths, 1.0)   # guard all-pad rows (ref -> NaN)
    n_pad = jnp.float32(l_pad) - lengths                         # (Bp, 1)

    grid = (b_pad // tb_eff, n_l)

    def run(single_buffer_weights):
        if single_buffer_weights:
            def resident(shape):
                return pl.BlockSpec(shape, lambda i, l: (0, 0),
                                    pipeline_mode=pl.Buffered(1))
        else:
            def resident(shape):
                return pl.BlockSpec(shape, lambda i, l: (0, 0))

        return pl.pallas_call(
            _input_attention_kernel,
            out_shape=jax.ShapeDtypeStruct((b_pad, e_pad), jnp.float32),
            grid_spec=pltpu.PrefetchScalarGridSpec(
                num_scalar_prefetch=0,
                grid=grid,
                in_specs=[
                    pl.BlockSpec((tb_eff, tl, e_pad), lambda i, l: (i, l, 0)),  # ce
                    pl.BlockSpec((tb_eff, 1), lambda i, l: (i, 0)),             # inv_len
                    pl.BlockSpec((tb_eff, 1), lambda i, l: (i, 0)),             # n_pad
                    pl.BlockSpec((tb_eff, e_pad), lambda i, l: (i, 0)),         # x_embs
                    resident((e_pad, h_pad)),                                   # W1^T
                    resident((1, h_pad)),                                       # b1
                    resident((1, h_pad)),                                       # pad-row h
                    resident((h_pad, e_pad)),                                   # W2^T
                    resident((1, e_pad)),                                       # b2
                ],
                out_specs=pl.BlockSpec((tb_eff, e_pad), lambda i, l: (i, 0)),
                scratch_shapes=[pltpu.VMEM((tb_eff, h_pad), jnp.float32)],
            ),
            compiler_params=pltpu.CompilerParams(
                dimension_semantics=("parallel", "arbitrary"),
                vmem_limit_bytes=_default_vmem_limit_bytes()),
        )(ce, inv_len, n_pad, xe,
          params["w1_t"], params["b1_r"], params["hpad_r"],
          params["w2_t"], params["b2_r"])

    try:
        out = jax.block_until_ready(run(True))
    except Exception:
        # Fallback if this runtime rejects single-buffered resident blocks.
        out = jax.block_until_ready(run(False))
    return out[:B, :E]


def _reference_forward(word, context, emb_table, padding_idx, w1, b1, w2, b2):
    """Pure-JAX f32 mirror of the PyTorch forward (eval mode)."""
    x_embs = jnp.take(emb_table, word[:, 0], axis=0)
    ctx_embs = jnp.take(emb_table, context, axis=0)
    not_pad = (context != padding_idx).astype(jnp.float32)
    lengths = not_pad.sum(axis=1, keepdims=True)
    h = jax.nn.relu(ctx_embs @ w1.T + b1)                        # (B, L, H)
    pooled = (h * not_pad[:, :, None]).sum(axis=1) / lengths     # (B, H)
    logits = pooled @ w2.T + b2
    return jax.nn.sigmoid(logits) * x_embs


if __name__ == "__main__":
    # Small, forward-consistent sizes.
    n_attn_tokens = 16      # vocab
    n_attn_embsize = 32     # E
    n_attn_hid = 32         # H
    B, L = 2, 8
    padding_idx = 0

    key = jax.random.PRNGKey(0)
    k_emb, k_w1, k_w2, k_word, k_ctx = jax.random.split(key, 5)

    # Deterministic init mirroring init_attn():
    initrange = 0.5 / n_attn_embsize
    emb_table = jax.random.uniform(
        k_emb, (n_attn_tokens, n_attn_embsize),
        minval=-initrange, maxval=initrange, dtype=jnp.float32)
    emb_table = emb_table.at[padding_idx].set(0.0)  # nn.Embedding padding_idx row

    def xavier_uniform(k, shape):  # shape = (fan_out, fan_in) like torch Linear.weight
        fan_out, fan_in = shape
        bound = (6.0 / (fan_in + fan_out)) ** 0.5
        return jax.random.uniform(k, shape, minval=-bound, maxval=bound,
                                  dtype=jnp.float32)

    w1 = xavier_uniform(k_w1, (n_attn_hid, n_attn_embsize))   # ann[1].weight
    b1 = jnp.zeros((n_attn_hid,), jnp.float32)                # ann[1].bias
    w2 = xavier_uniform(k_w2, (n_attn_embsize, n_attn_hid))   # a_linear.weight
    b2 = jnp.zeros((n_attn_embsize,), jnp.float32)            # a_linear.bias

    # Inputs: word (B,1), context (B,L) with some padding.
    word = jax.random.randint(k_word, (B, 1), 1, n_attn_tokens, dtype=jnp.int32)
    context = jax.random.randint(k_ctx, (B, L), 1, n_attn_tokens, dtype=jnp.int32)
    context = context.at[0, L - 2:].set(padding_idx)   # pad tail of example 0
    context = context.at[1, L - 1:].set(padding_idx)   # pad tail of example 1

    # One-time preprocessing (cache this at module init in real use).
    params = prepare_input_attention_params(emb_table, padding_idx, w1, b1, w2, b2)

    out = input_attention_forward(word, context, params)
    out = jax.block_until_ready(out)

    ref = _reference_forward(word, context, emb_table, padding_idx, w1, b1, w2, b2)
    assert out.shape == (B, n_attn_embsize)
    # bf16 MXU operands vs pure-f32 reference: tiny absolute error at these scales.
    assert jnp.allclose(out, ref, atol=1e-3, rtol=1e-2), float(jnp.abs(out - ref).max())

    print("KERNEL_OK")
</pallas_src>

<mosaic_0001>
module attributes {stable_mosaic.version = 11 : i64} {
  func.func @_input_attention_kernel(%arg0: i32, %arg1: i32, %arg2: memref<8x8x128xbf16, #tpu.memory_space<vmem>>, %arg3: memref<8x1xf32, #tpu.memory_space<vmem>>, %arg4: memref<8x1xf32, #tpu.memory_space<vmem>>, %arg5: memref<8x128xbf16, #tpu.memory_space<vmem>>, %arg6: memref<128x128xbf16, #tpu.memory_space<vmem>>, %arg7: memref<1x128xf32, #tpu.memory_space<vmem>>, %arg8: memref<1x128xf32, #tpu.memory_space<vmem>>, %arg9: memref<128x128xbf16, #tpu.memory_space<vmem>>, %arg10: memref<1x128xf32, #tpu.memory_space<vmem>>, %arg11: memref<8x128xf32, #tpu.memory_space<vmem>>, %arg12: memref<8x128xf32, #tpu.memory_space<vmem>>) attributes {dimension_semantics = [#tpu.dimension_semantics<parallel>, #tpu.dimension_semantics<arbitrary>], iteration_bounds = array<i64: 1, 1>, scalar_prefetch = 0 : i64, scratch_operands = 1 : i64, tpu.core_type = #tpu.core_type<tc>, window_params = [{transform_indices = @transform_0, window_bounds = array<i64: 8, 8, 128>}, {transform_indices = @transform_1, window_bounds = array<i64: 8, 1>}, {transform_indices = @transform_2, window_bounds = array<i64: 8, 1>}, {transform_indices = @transform_3, window_bounds = array<i64: 8, 128>}, {pipeline_mode = #tpu.pipeline_mode<synchronous>, transform_indices = @transform_4, window_bounds = array<i64: 128, 128>}, {pipeline_mode = #tpu.pipeline_mode<synchronous>, transform_indices = @transform_5, window_bounds = array<i64: 1, 128>}, {pipeline_mode = #tpu.pipeline_mode<synchronous>, transform_indices = @transform_6, window_bounds = array<i64: 1, 128>}, {pipeline_mode = #tpu.pipeline_mode<synchronous>, transform_indices = @transform_7, window_bounds = array<i64: 128, 128>}, {pipeline_mode = #tpu.pipeline_mode<synchronous>, transform_indices = @transform_8, window_bounds = array<i64: 1, 128>}, {transform_indices = @transform_9, window_bounds = array<i64: 8, 128>}]} {
    %c0_i32 = arith.constant 0 : i32
    %0 = arith.cmpi eq, %arg1, %c0_i32 : i32
    %1 = arith.extui %0 : i1 to i32
    %c0_i32_0 = arith.constant 0 : i32
    %2 = arith.cmpi ne, %1, %c0_i32_0 : i32
    scf.if %2 {
      %cst_15 = arith.constant 0.000000e+00 : f32
      %20 = vector.broadcast %cst_15 : f32 to vector<8x128xf32>
      %c0_16 = arith.constant 0 : index
      %c0_17 = arith.constant 0 : index
      %21 = vector.load %arg12[%c0_16, %c0_17] : memref<8x128xf32, #tpu.memory_space<vmem>>, vector<8x128xf32>
      tpu.vector_store %arg12[%c0_16, %c0_17], %20 {strides = array<i32>} : memref<8x128xf32, #tpu.memory_space<vmem>>, vector<8x128xf32>,
    } else {
    }
    %c0 = arith.constant 0 : index
    %c0_1 = arith.constant 0 : index
    %c0_2 = arith.constant 0 : index
    %3 = vector.load %arg2[%c0, %c0_1, %c0_2] : memref<8x8x128xbf16, #tpu.memory_space<vmem>>, vector<8x8x128xbf16>
    %4 = vector.shape_cast %3 : vector<8x8x128xbf16> to vector<64x128xbf16>
    %c0_3 = arith.constant 0 : index
    %c0_4 = arith.constant 0 : index
    %5 = vector.load %arg6[%c0_3, %c0_4] : memref<128x128xbf16, #tpu.memory_space<vmem>>, vector<128x128xbf16>
    %cst = arith.constant dense<0.000000e+00> : vector<64x128xf32>
    %6 = tpu.matmul %4, %5, %cst {dimension_numbers = #tpu.dot_dimension_numbers<[1], [0], [0], [1], [0, 0, 1, 1], [], []>} : vector<64x128xbf16>, vector<128x128xbf16>, vector<64x128xf32> -> vector<64x128xf32>
    %c0_5 = arith.constant 0 : index
    %c0_6 = arith.constant 0 : index
    %7 = vector.load %arg7[%c0_5, %c0_6] : memref<1x128xf32, #tpu.memory_space<vmem>>, vector<1x128xf32>
    %8 = vector.broadcast %7 : vector<1x128xf32> to vector<64x128xf32>
    %9 = arith.addf %6, %8 : vector<64x128xf32>
    %cst_7 = arith.constant 0.000000e+00 : f32
    %10 = vector.broadcast %cst_7 : f32 to vector<64x128xf32>
    %11 = arith.maximumf %9, %10 : vector<64x128xf32>
    %c0_8 = arith.constant 0 : index
    %c0_9 = arith.constant 0 : index
    %12 = vector.load %arg12[%c0_8, %c0_9] : memref<8x128xf32, #tpu.memory_space<vmem>>, vector<8x128xf32>
    %13 = vector.shape_cast %11 : vector<64x128xf32> to vector<8x8x128xf32>
    %cst_10 = arith.constant dense<0.000000e+00> : vector<8x128xf32>
    %14 = vector.multi_reduction <add>, %13, %cst_10 [1] : vector<8x8x128xf32> to vector<8x128xf32>
    %15 = arith.addf %12, %14 : vector<8x128xf32>
    %c0_11 = arith.constant 0 : index
    %c0_12 = arith.constant 0 : index
    %16 = vector.load %arg12[%c0_11, %c0_12] : memref<8x128xf32, #tpu.memory_space<vmem>>, vector<8x128xf32>
    tpu.vector_store %arg12[%c0_11, %c0_12], %15 {strides = array<i32>} : memref<8x128xf32, #tpu.memory_space<vmem>>, vector<8x128xf32>,
    %c0_i32_13 = arith.constant 0 : i32
    %17 = arith.cmpi eq, %arg1, %c0_i32_13 : i32
    %18 = arith.extui %17 : i1 to i32
    %c0_i32_14 = arith.constant 0 : i32
    %19 = arith.cmpi ne, %18, %c0_i32_14 : i32
    scf.if %19 {
      %c0_15 = arith.constant 0 : index
      %c0_16 = arith.constant 0 : index
      %20 = vector.load %arg12[%c0_15, %c0_16] : memref<8x128xf32, #tpu.memory_space<vmem>>, vector<8x128xf32>
      %c0_17 = arith.constant 0 : index
      %c0_18 = arith.constant 0 : index
      %21 = vector.load %arg4[%c0_17, %c0_18] : memref<8x1xf32, #tpu.memory_space<vmem>>, vector<8x1xf32>
      %c0_19 = arith.constant 0 : index
      %c0_20 = arith.constant 0 : index
      %22 = vector.load %arg8[%c0_19, %c0_20] : memref<1x128xf32, #tpu.memory_space<vmem>>, vector<1x128xf32>
      %23 = vector.broadcast %21 : vector<8x1xf32> to vector<8x128xf32>
      %24 = vector.broadcast %22 : vector<1x128xf32> to vector<8x128xf32>
      %25 = arith.mulf %23, %24 : vector<8x128xf32>
      %26 = arith.subf %20, %25 : vector<8x128xf32>
      %c0_21 = arith.constant 0 : index
      %c0_22 = arith.constant 0 : index
      %27 = vector.load %arg3[%c0_21, %c0_22] : memref<8x1xf32, #tpu.memory_space<vmem>>, vector<8x1xf32>
      %28 = vector.broadcast %27 : vector<8x1xf32> to vector<8x128xf32>
      %29 = arith.mulf %26, %28 : vector<8x128xf32>
      %30 = arith.truncf %29 : vector<8x128xf32> to vector<8x128xbf16>
      %c0_23 = arith.constant 0 : index
      %c0_24 = arith.constant 0 : index
      %31 = vector.load %arg9[%c0_23, %c0_24] : memref<128x128xbf16, #tpu.memory_space<vmem>>, vector<128x128xbf16>
      %cst_25 = arith.constant dense<0.000000e+00> : vector<8x128xf32>
      %32 = tpu.matmul %30, %31, %cst_25 {dimension_numbers = #tpu.dot_dimension_numbers<[1], [0], [0], [1], [0, 0, 1, 1], [], []>} : vector<8x128xbf16>, vector<128x128xbf16>, vector<8x128xf32> -> vector<8x128xf32>
      %c0_26 = arith.constant 0 : index
      %c0_27 = arith.constant 0 : index
      %33 = vector.load %arg10[%c0_26, %c0_27] : memref<1x128xf32, #tpu.memory_space<vmem>>, vector<1x128xf32>
      %34 = vector.broadcast %33 : vector<1x128xf32> to vector<8x128xf32>
      %35 = arith.addf %32, %34 : vector<8x128xf32>
      %36 = arith.negf %35 : vector<8x128xf32>
      %37 = math.exp %36 : vector<8x128xf32>
      %cst_28 = arith.constant 1.000000e+00 : f32
      %38 = vector.broadcast %cst_28 : f32 to vector<8x128xf32>
      %39 = arith.addf %38, %37 : vector<8x128xf32>
      %40 = arith.divf %38, %39 : vector<8x128xf32>
      %c0_29 = arith.constant 0 : index
      %c0_30 = arith.constant 0 : index
      %41 = vector.load %arg5[%c0_29, %c0_30] : memref<8x128xbf16, #tpu.memory_space<vmem>>, vector<8x128xbf16>
      %42 = arith.extf %41 : vector<8x128xbf16> to vector<8x128xf32>
      %43 = arith.mulf %40, %42 : vector<8x128xf32>
      %c0_31 = arith.constant 0 : index
      %c0_32 = arith.constant 0 : index
      %44 = vector.load %arg11[%c0_31, %c0_32] : memref<8x128xf32, #tpu.memory_space<vmem>>, vector<8x128xf32>
      tpu.vector_store %arg11[%c0_31, %c0_32], %43 {strides = array<i32>} : memref<8x128xf32, #tpu.memory_space<vmem>>, vector<8x128xf32>,
    } else {
    }
    return
  }
  func.func @transform_0(%arg0: i32, %arg1: i32) -> (i32, i32, i32) {
    %c0_i32 = arith.constant 0 : i32
    %c0_i32_0 = arith.constant 0 : i32
    return %arg0, %arg1, %c0_i32 : i32, i32, i32
  }
  func.func @transform_1(%arg0: i32, %arg1: i32) -> (i32, i32) {
    %c0_i32 = arith.constant 0 : i32
    %c0_i32_0 = arith.constant 0 : i32
    return %arg0, %c0_i32 : i32, i32
  }
  func.func @transform_2(%arg0: i32, %arg1: i32) -> (i32, i32) {
    %c0_i32 = arith.constant 0 : i32
    %c0_i32_0 = arith.constant 0 : i32
    return %arg0, %c0_i32 : i32, i32
  }
  func.func @transform_3(%arg0: i32, %arg1: i32) -> (i32, i32) {
    %c0_i32 = arith.constant 0 : i32
    %c0_i32_0 = arith.constant 0 : i32
    return %arg0, %c0_i32 : i32, i32
  }
  func.func @transform_4(%arg0: i32, %arg1: i32) -> (i32, i32) {
    %c0_i32 = arith.constant 0 : i32
    %c0_i32_0 = arith.constant 0 : i32
    %c0_i32_1 = arith.constant 0 : i32
    return %c0_i32, %c0_i32_0 : i32, i32
  }
  func.func @transform_5(%arg0: i32, %arg1: i32) -> (i32, i32) {
    %c0_i32 = arith.constant 0 : i32
    %c0_i32_0 = arith.constant 0 : i32
    %c0_i32_1 = arith.constant 0 : i32
    return %c0_i32, %c0_i32_0 : i32, i32
  }
  func.func @transform_6(%arg0: i32, %arg1: i32) -> (i32, i32) {
    %c0_i32 = arith.constant 0 : i32
    %c0_i32_0 = arith.constant 0 : i32
    %c0_i32_1 = arith.constant 0 : i32
    return %c0_i32, %c0_i32_0 : i32, i32
  }
  func.func @transform_7(%arg0: i32, %arg1: i32) -> (i32, i32) {
    %c0_i32 = arith.constant 0 : i32
    %c0_i32_0 = arith.constant 0 : i32
    %c0_i32_1 = arith.constant 0 : i32
    return %c0_i32, %c0_i32_0 : i32, i32
  }
  func.func @transform_8(%arg0: i32, %arg1: i32) -> (i32, i32) {
    %c0_i32 = arith.constant 0 : i32
    %c0_i32_0 = arith.constant 0 : i32
    %c0_i32_1 = arith.constant 0 : i32
    return %c0_i32, %c0_i32_0 : i32, i32
  }
  func.func @transform_9(%arg0: i32, %arg1: i32) -> (i32, i32) {
    %c0_i32 = arith.constant 0 : i32
    %c0_i32_0 = arith.constant 0 : i32
    return %arg0, %c0_i32 : i32, i32
  }
}

module attributes {stable_mosaic.version = 11 : i64} {
  func.func @_input_attention_kernel(%arg0: i32, %arg1: i32, %arg2: memref<8x8x128xbf16, #tpu.memory_space<vmem>>, %arg3: memref<8x1xf32, #tpu.memory_space<vmem>>, %arg4: memref<8x1xf32, #tpu.memory_space<vmem>>, %arg5: memref<8x128xbf16, #tpu.memory_space<vmem>>, %arg6: memref<128x128xbf16, #tpu.memory_space<vmem>>, %arg7: memref<1x128xf32, #tpu.memory_space<vmem>>, %arg8: memref<1x128xf32, #tpu.memory_space<vmem>>, %arg9: memref<128x128xbf16, #tpu.memory_space<vmem>>, %arg10: memref<1x128xf32, #tpu.memory_space<vmem>>, %arg11: memref<8x128xf32, #tpu.memory_space<vmem>>, %arg12: memref<8x128xf32, #tpu.memory_space<vmem>>) attributes {dimension_semantics = [#tpu.dimension_semantics<parallel>, #tpu.dimension_semantics<arbitrary>], iteration_bounds = array<i64: 1, 1>, scalar_prefetch = 0 : i64, scratch_operands = 1 : i64, tpu.core_type = #tpu.core_type<tc>, window_params = [{transform_indices = @transform_0, window_bounds = array<i64: 8, 8, 128>}, {transform_indices = @transform_1, window_bounds = array<i64: 8, 1>}, {transform_indices = @transform_2, window_bounds = array<i64: 8, 1>}, {transform_indices = @transform_3, window_bounds = array<i64: 8, 128>}, {pipeline_mode = #tpu.pipeline_mode<synchronous>, transform_indices = @transform_4, window_bounds = array<i64: 128, 128>}, {pipeline_mode = #tpu.pipeline_mode<synchronous>, transform_indices = @transform_5, window_bounds = array<i64: 1, 128>}, {pipeline_mode = #tpu.pipeline_mode<synchronous>, transform_indices = @transform_6, window_bounds = array<i64: 1, 128>}, {pipeline_mode = #tpu.pipeline_mode<synchronous>, transform_indices = @transform_7, window_bounds = array<i64: 128, 128>}, {pipeline_mode = #tpu.pipeline_mode<synchronous>, transform_indices = @transform_8, window_bounds = array<i64: 1, 128>}, {transform_indices = @transform_9, window_bounds = array<i64: 8, 128>}]} {
    %c0_i32 = arith.constant 0 : i32
    %0 = arith.cmpi eq, %arg1, %c0_i32 : i32
    %1 = arith.extui %0 : i1 to i32
    %c0_i32_0 = arith.constant 0 : i32
    %2 = arith.cmpi ne, %1, %c0_i32_0 : i32
    scf.if %2 {
      %cst_15 = arith.constant 0.000000e+00 : f32
      %20 = vector.broadcast %cst_15 : f32 to vector<8x128xf32>
      %c0_16 = arith.constant 0 : index
      %c0_17 = arith.constant 0 : index
      %21 = vector.load %arg12[%c0_16, %c0_17] : memref<8x128xf32, #tpu.memory_space<vmem>>, vector<8x128xf32>
      tpu.vector_store %arg12[%c0_16, %c0_17], %20 {strides = array<i32>} : memref<8x128xf32, #tpu.memory_space<vmem>>, vector<8x128xf32>,
    } else {
    }
    %c0 = arith.constant 0 : index
    %c0_1 = arith.constant 0 : index
    %c0_2 = arith.constant 0 : index
    %3 = vector.load %arg2[%c0, %c0_1, %c0_2] : memref<8x8x128xbf16, #tpu.memory_space<vmem>>, vector<8x8x128xbf16>
    %4 = vector.shape_cast %3 : vector<8x8x128xbf16> to vector<64x128xbf16>
    %c0_3 = arith.constant 0 : index
    %c0_4 = arith.constant 0 : index
    %5 = vector.load %arg6[%c0_3, %c0_4] : memref<128x128xbf16, #tpu.memory_space<vmem>>, vector<128x128xbf16>
    %cst = arith.constant dense<0.000000e+00> : vector<64x128xf32>
    %6 = tpu.matmul %4, %5, %cst {dimension_numbers = #tpu.dot_dimension_numbers<[1], [0], [0], [1], [0, 0, 1, 1], [], []>} : vector<64x128xbf16>, vector<128x128xbf16>, vector<64x128xf32> -> vector<64x128xf32>
    %c0_5 = arith.constant 0 : index
    %c0_6 = arith.constant 0 : index
    %7 = vector.load %arg7[%c0_5, %c0_6] : memref<1x128xf32, #tpu.memory_space<vmem>>, vector<1x128xf32>
    %8 = vector.broadcast %7 : vector<1x128xf32> to vector<64x128xf32>
    %9 = arith.addf %6, %8 : vector<64x128xf32>
    %cst_7 = arith.constant 0.000000e+00 : f32
    %10 = vector.broadcast %cst_7 : f32 to vector<64x128xf32>
    %11 = arith.maximumf %9, %10 : vector<64x128xf32>
    %c0_8 = arith.constant 0 : index
    %c0_9 = arith.constant 0 : index
    %12 = vector.load %arg12[%c0_8, %c0_9] : memref<8x128xf32, #tpu.memory_space<vmem>>, vector<8x128xf32>
    %13 = vector.shape_cast %11 : vector<64x128xf32> to vector<8x8x128xf32>
    %cst_10 = arith.constant dense<0.000000e+00> : vector<8x128xf32>
    %14 = vector.multi_reduction <add>, %13, %cst_10 [1] : vector<8x8x128xf32> to vector<8x128xf32>
    %15 = arith.addf %12, %14 : vector<8x128xf32>
    %c0_11 = arith.constant 0 : index
    %c0_12 = arith.constant 0 : index
    %16 = vector.load %arg12[%c0_11, %c0_12] : memref<8x128xf32, #tpu.memory_space<vmem>>, vector<8x128xf32>
    tpu.vector_store %arg12[%c0_11, %c0_12], %15 {strides = array<i32>} : memref<8x128xf32, #tpu.memory_space<vmem>>, vector<8x128xf32>,
    %c0_i32_13 = arith.constant 0 : i32
    %17 = arith.cmpi eq, %arg1, %c0_i32_13 : i32
    %18 = arith.extui %17 : i1 to i32
    %c0_i32_14 = arith.constant 0 : i32
    %19 = arith.cmpi ne, %18, %c0_i32_14 : i32
    scf.if %19 {
      %c0_15 = arith.constant 0 : index
      %c0_16 = arith.constant 0 : index
      %20 = vector.load %arg12[%c0_15, %c0_16] : memref<8x128xf32, #tpu.memory_space<vmem>>, vector<8x128xf32>
      %c0_17 = arith.constant 0 : index
      %c0_18 = arith.constant 0 : index
      %21 = vector.load %arg4[%c0_17, %c0_18] : memref<8x1xf32, #tpu.memory_space<vmem>>, vector<8x1xf32>
      %c0_19 = arith.constant 0 : index
      %c0_20 = arith.constant 0 : index
      %22 = vector.load %arg8[%c0_19, %c0_20] : memref<1x128xf32, #tpu.memory_space<vmem>>, vector<1x128xf32>
      %23 = vector.broadcast %21 : vector<8x1xf32> to vector<8x128xf32>
      %24 = vector.broadcast %22 : vector<1x128xf32> to vector<8x128xf32>
      %25 = arith.mulf %23, %24 : vector<8x128xf32>
      %26 = arith.subf %20, %25 : vector<8x128xf32>
      %c0_21 = arith.constant 0 : index
      %c0_22 = arith.constant 0 : index
      %27 = vector.load %arg3[%c0_21, %c0_22] : memref<8x1xf32, #tpu.memory_space<vmem>>, vector<8x1xf32>
      %28 = vector.broadcast %27 : vector<8x1xf32> to vector<8x128xf32>
      %29 = arith.mulf %26, %28 : vector<8x128xf32>
      %30 = arith.truncf %29 : vector<8x128xf32> to vector<8x128xbf16>
      %c0_23 = arith.constant 0 : index
      %c0_24 = arith.constant 0 : index
      %31 = vector.load %arg9[%c0_23, %c0_24] : memref<128x128xbf16, #tpu.memory_space<vmem>>, vector<128x128xbf16>
      %cst_25 = arith.constant dense<0.000000e+00> : vector<8x128xf32>
      %32 = tpu.matmul %30, %31, %cst_25 {dimension_numbers = #tpu.dot_dimension_numbers<[1], [0], [0], [1], [0, 0, 1, 1], [], []>} : vector<8x128xbf16>, vector<128x128xbf16>, vector<8x128xf32> -> vector<8x128xf32>
      %c0_26 = arith.constant 0 : index
      %c0_27 = arith.constant 0 : index
      %33 = vector.load %arg10[%c0_26, %c0_27] : memref<1x128xf32, #tpu.memory_space<vmem>>, vector<1x128xf32>
      %34 = vector.broadcast %33 : vector<1x128xf32> to vector<8x128xf32>
      %35 = arith.addf %32, %34 : vector<8x128xf32>
      %36 = arith.negf %35 : vector<8x128xf32>
      %37 = math.exp %36 : vector<8x128xf32>
      %cst_28 = arith.constant 1.000000e+00 : f32
      %38 = vector.broadcast %cst_28 : f32 to vector<8x128xf32>
      %39 = arith.addf %38, %37 : vector<8x128xf32>
      %40 = arith.divf %38, %39 : vector<8x128xf32>
      %c0_29 = arith.constant 0 : index
      %c0_30 = arith.constant 0 : index
      %41 = vector.load %arg5[%c0_29, %c0_30] : memref<8x128xbf16, #tpu.memory_space<vmem>>, vector<8x128xbf16>
      %42 = arith.extf %41 : vector<8x128xbf16> to vector<8x128xf32>
      %43 = arith.mulf %40, %42 : vector<8x128xf32>
      %c0_31 = arith.constant 0 : index
      %c0_32 = arith.constant 0 : index
      %44 = vector.load %arg11[%c0_31, %c0_32] : memref<8x128xf32, #tpu.memory_space<vmem>>, vector<8x128xf32>
      tpu.vector_store %arg11[%c0_31, %c0_32], %43 {strides = array<i32>} : memref<8x128xf32, #tpu.memory_space<vmem>>, vector<8x128xf32>,
    } else {
    }
    return
  }
  func.func @transform_0(%arg0: i32, %arg1: i32) -> (i32, i32, i32) {
    %c0_i32 = arith.constant 0 : i32
    %c0_i32_0 = arith.constant 0 : i32
    return %arg0, %arg1, %c0_i32 : i32, i32, i32
  }
  func.func @transform_1(%arg0: i32, %arg1: i32) -> (i32, i32) {
    %c0_i32 = arith.constant 0 : i32
    %c0_i32_0 = arith.constant 0 : i32
    return %arg0, %c0_i32 : i32, i32
  }
  func.func @transform_2(%arg0: i32, %arg1: i32) -> (i32, i32) {
    %c0_i32 = arith.constant 0 : i32
    %c0_i32_0 = arith.constant 0 : i32
    return %arg0, %c0_i32 : i32, i32
  }
  func.func @transform_3(%arg0: i32, %arg1: i32) -> (i32, i32) {
    %c0_i32 = arith.constant 0 : i32
    %c0_i32_0 = arith.constant 0 : i32
    return %arg0, %c0_i32 : i32, i32
  }
  func.func @transform_4(%arg0: i32, %arg1: i32) -> (i32, i32) {
    %c0_i32 = arith.constant 0 : i32
    %c0_i32_0 = arith.constant 0 : i32
    %c0_i32_1 = arith.constant 0 : i32
    return %c0_i32, %c0_i32_0 : i32, i32
  }
  func.func @transform_5(%arg0: i32, %arg1: i32) -> (i32, i32) {
    %c0_i32 = arith.constant 0 : i32
    %c0_i32_0 = arith.constant 0 : i32
    %c0_i32_1 = arith.constant 0 : i32
    return %c0_i32, %c0_i32_0 : i32, i32
  }
  func.func @transform_6(%arg0: i32, %arg1: i32) -> (i32, i32) {
    %c0_i32 = arith.constant 0 : i32
    %c0_i32_0 = arith.constant 0 : i32
    %c0_i32_1 = arith.constant 0 : i32
    return %c0_i32, %c0_i32_0 : i32, i32
  }
  func.func @transform_7(%arg0: i32, %arg1: i32) -> (i32, i32) {
    %c0_i32 = arith.constant 0 : i32
    %c0_i32_0 = arith.constant 0 : i32
    %c0_i32_1 = arith.constant 0 : i32
    return %c0_i32, %c0_i32_0 : i32, i32
  }
  func.func @transform_8(%arg0: i32, %arg1: i32) -> (i32, i32) {
    %c0_i32 = arith.constant 0 : i32
    %c0_i32_0 = arith.constant 0 : i32
    %c0_i32_1 = arith.constant 0 : i32
    return %c0_i32, %c0_i32_0 : i32, i32
  }
  func.func @transform_9(%arg0: i32, %arg1: i32) -> (i32, i32) {
    %c0_i32 = arith.constant 0 : i32
    %c0_i32_0 = arith.constant 0 : i32
    return %arg0, %c0_i32 : i32, i32
  }
}

</mosaic_0001>

<bundles_post_ra>
// kernel: tpu_custom_call.1
= control target key start
LH: loop header
LB: loop body
LE: loop exit
PB: predicated region body
PF: predicated region fallthrough
CT: control target
= control target key end

     0   :  { %14 = vsyncpa [#allocation4], 0  ;;  %s792_s0 = inlined_call_operand.hbm [shape: bf16[8,8,128], index: 0, kind: input, shape index: {}]   ;;  %s793_s1 = inlined_call_operand.vmem [shape: f32[8,1], index: 1, kind: input, shape index: {}]   ;;  %s794_s2 = inlined_call_operand.vmem [shape: f32[8,1], index: 2, kind: input, shape index: {}]   ;;  %s795_s3 = inlined_call_operand.vmem [shape: bf16[8,128], index: 3, kind: input, shape index: {}]   ;;  %s796_s4 = inlined_call_operand.hbm [shape: bf16[128,128], index: 4, kind: input, shape index: {}]   ;;  %s797_s5 = inlined_call_operand.vmem [shape: f32[1,128], index: 5, kind: input, shape index: {}]   ;;  %s798_s6 = inlined_call_operand.vmem [shape: f32[1,128], index: 6, kind: input, shape index: {}]   ;;  %s799_s7 = inlined_call_operand.hbm [shape: bf16[128,128], index: 7, kind: input, shape index: {}]   ;;  %s800_s8 = inlined_call_operand.vmem [shape: f32[1,128], index: 8, kind: input, shape index: {}]   ;;  %s801_s9 = inlined_call_operand.hbm [shape: f32[8,128], index: 9, kind: output, shape index: {}]  }
   0x1   :  { %15 = vsyncpa [#allocation7], 0 }
   0x2   :  { %16 = vsyncpa [#allocation5], 0  ;;  %s703_s30 = smov [#allocation6]   ;;  %s704_s11 = smov [#allocation3]  }
   0x3   :  { %s40_s10 = sshll.u32 %s703_s30, 4  ;;  %s22_s12 = sshll.u32 %s704_s11, 4  ;;  %s41_s10 = int_to_ptr.vmem [resolvable:$true] %s40_s10  ;;  %s23_s12 = int_to_ptr.vmem [resolvable:$true] %s22_s12 }
   0x4   :  { %s625_s13 = scalar_lea.vmem %s41_s10, 1024  ;;  %p630_p1 = scmp.lt.s32.totalorder %s41_s10, %s41_s10 }
   0x5   :  { %p626_p0 = scmp.ne.s32.totalorder %s41_s10, %s625_s13  ;;  %p631_p2 = scmp.lt.s32.totalorder %s625_s13, %s625_s13 }
   0x7   :  { %p632_p3 = por %p631_p2, %p630_p1 }
   0x9   :  { %p633_p4 = pnand %p632_p3, %p626_p0 }
   0xb   :  { %636 = shalt.err (!%p633_p4)
}
   0xc   :  { %s705_s14 = smov 64   ;;  %s706_s15 = smov 4  }
   0xd   :  { %46 = dma.hbm_to_vmem [thread:$0]  %s796_s4, 1024, %s41_s10, [#allocation7], %s705_s14, %s705_s14, %s706_s15  }
   0xe   :  { %s645_s18 = scalar_lea.vmem %s23_s12, 512  ;;  %p650_p6 = scmp.lt.s32.totalorder %s23_s12, %s23_s12 }
   0xf   :  { %p646_p5 = scmp.ne.s32.totalorder %s23_s12, %s645_s18  ;;  %p651_p7 = scmp.lt.s32.totalorder %s645_s18, %s645_s18 }
  0x11   :  { %p652_p8 = por %p651_p7, %p650_p6 }
  0x13   :  { %p653_p9 = pnand %p652_p8, %p646_p5 }
  0x15   :  { %656 = shalt.err (!%p653_p9)
}
  0x16   :  { %28 = dma.hbm_to_vmem [thread:$0]  %s792_s0, 512, %s23_s12, [#allocation4], %s705_s14, %s705_s14, %s706_s15  }
  0x17   :  { %s707_s21 = smov [#allocation8]  }
  0x18   :  { %s56_s22 = sshll.u32 %s707_s21, 4  ;;  %s57_s22 = int_to_ptr.vmem [resolvable:$true] %s56_s22 }
  0x19   :  { %s665_s23 = scalar_lea.vmem %s57_s22, 1024  ;;  %p670_p11 = scmp.lt.s32.totalorder %s57_s22, %s57_s22 }
  0x1a   :  { %p666_p10 = scmp.ne.s32.totalorder %s57_s22, %s665_s23  ;;  %p671_p12 = scmp.lt.s32.totalorder %s665_s23, %s665_s23 }
  0x1c   :  { %p672_p13 = por %p671_p12, %p670_p11 }
  0x1e   :  { %p673_p0 = pnand %p672_p13, %p666_p10 }
  0x20   :  { %676 = shalt.err (!%p673_p0)
}
  0x21   :  { %62 = dma.hbm_to_vmem [thread:$0]  %s799_s7, 1024, %s57_s22, [#allocation7], %s705_s14, %s705_s14, %s706_s15  }
  0x22   :  { %697 = dma.done.wait [#allocation4], 512  }
  0x23   :  { %698 = vsyncadd [#allocation4], 4294966784 }
  0x24   :  { %699 = dma.done.wait [#allocation7], 2048  }
  0x25   :  { %700 = vsyncadd [#allocation7], 4294965248  ;;  %v708_v0 = vmov 0   ;;  %v593_v1 = vld [vmem:[#allocation6 + $0x38] sm:$0xff]   ;;  %v594_v2 = vld [vmem:[#allocation6 + $0x30] sm:$0xff]   ;;  %v709_v16 = vmov 0.0  }
  0x26   :  { %592 = vset.pattern.permute.xlu0 %v708_v0  ;;  %539 = vmatprep.subr.bf16.mxu0 %v593_v1  ;;  %v595_v3 = vld [vmem:[#allocation6 + $0x28] sm:$0xff]   ;;  %v596_v4 = vld [vmem:[#allocation6 + $0x20] sm:$0xff]   ;;  %v597_v6 = vld [vmem:[#allocation6 + $0x18] sm:$0xff]   ;;  %vm710_vm0 = vmmov 0   ;;  %vm313_vm1 = vcmask 1041409   ;;  %vm315_vm2 = vcmask 1042434  }
  0x27   :  { %540 = vmatpush3.bf16.msra.mxu0 %v593_v1  ;;  %v601_v5 = vld [vmem:[#allocation3] sm:$0xff]   ;;  %v598_v9 = vld [vmem:[#allocation6 + $0x10] sm:$0xff]   ;;  %v599_v10 = vld [vmem:[#allocation6 + $0x8] sm:$0xff]   ;;  %563 = vmatprep.subr.bf16.mxu1 %v709_v16  ;;  %vm317_vm3 = vcmask 1043459   ;;  %vm319_vm4 = vcmask 1044484   ;;  %vm321_vm5 = vcmask 1045509  }
  0x28   :  { %541 = vmatprep.subr.bf16.mxu0 %v594_v2  ;;  %555 = vmatprep.mubr.bf16.mxu0 %v601_v5  ;;  %v334_v7 = vld [vmem:[%s794_s2] sm:$0xff]  ;;  %v602_v12 = vld [vmem:[#allocation3 + $0x8] sm:$0xff]   ;;  %v603_v13 = vld [vmem:[#allocation3 + $0x10] sm:$0xff]   ;;  %vm323_vm6 = vcmask 1046534   ;;  %vm325_vm7 = vcmask 1047559   ;;  %s711_s10 = smov [#allocation9]  }
  0x29   :  { %v349_v8 = vld [vmem:[%s793_s1] sm:$0xff]  ;;  %338 = vperm.xlu0 %592, %v334_v7   ;;  %v604_v14 = vld [vmem:[#allocation3 + $0x18] sm:$0xff]   ;;  %v606_v17 = vld [vmem:[#allocation8 + $0x30] sm:$0xff]   ;;  %579 = vmatprep.mubr.msk.bf16.mxu1 %vm710_vm0, %v709_v16  ;;  %s484_s11 = sshll.u32 %s711_s10, 4  ;;  %s485_s11 = int_to_ptr.vmem [resolvable:$true] %s484_s11 }
  0x2a   :  { %v600_v11 = vld [vmem:[#allocation6] sm:$0xff]   ;;  %v605_v15 = vld [vmem:[#allocation8 + $0x38] sm:$0xff]   ;;  %v607_v18 = vld [vmem:[#allocation8 + $0x28] sm:$0xff]   ;;  %p682_p2 = scmp.lt.s32.totalorder %s485_s11, %s485_s11 }
  0x2b   :  { %542 = vmatpush3.bf16.msra.mxu0 %v594_v2  ;;  %564 = vmatpush3.bf16.msra.mxu1 %v605_v15  ;;  %v608_v19 = vld [vmem:[#allocation8 + $0x20] sm:$0xff]   ;;  %v609_v20 = vld [vmem:[#allocation8 + $0x18] sm:$0xff]   ;;  %v610_v21 = vld [vmem:[#allocation8 + $0x10] sm:$0xff]  }
  0x2c   :  { %543 = vmatprep.subr.bf16.mxu0 %v595_v3  ;;  %565 = vmatprep.subr.bf16.mxu1 %v709_v16  ;;  %v611_v22 = vld [vmem:[#allocation8 + $0x8] sm:$0xff]   ;;  %v612_v23 = vld [vmem:[#allocation8] sm:$0xff]  }
  0x2d   :  { %352 = vperm.xlu0 %592, %v349_v8   ;;  %v494_v24 = vld [vmem:[%s797_s5] ss:$0 sm:$0xff] }
  0x2f   :  { %544 = vmatpush3.bf16.msra.mxu0 %v595_v3  ;;  %566 = vmatpush3.bf16.msra.mxu1 %v606_v17 }
  0x30   :  { %545 = vmatprep.subr.bf16.mxu0 %v596_v4  ;;  %567 = vmatprep.subr.bf16.mxu1 %v709_v16 }
  0x33   :  { %546 = vmatpush3.bf16.msra.mxu0 %v596_v4  ;;  %568 = vmatpush3.bf16.msra.mxu1 %v607_v18 }
  0x34   :  { %547 = vmatprep.subr.bf16.mxu0 %v597_v6  ;;  %569 = vmatprep.subr.bf16.mxu1 %v709_v16 }
  0x37   :  { %548 = vmatpush3.bf16.msra.mxu0 %v597_v6  ;;  %570 = vmatpush3.bf16.msra.mxu1 %v608_v19 }
  0x38   :  { %549 = vmatprep.subr.bf16.mxu0 %v598_v9  ;;  %571 = vmatprep.subr.bf16.mxu1 %v709_v16 }
  0x3b   :  { %550 = vmatpush3.bf16.msra.mxu0 %v598_v9  ;;  %572 = vmatpush3.bf16.msra.mxu1 %v609_v20 }
  0x3c   :  { %551 = vmatprep.subr.bf16.mxu0 %v599_v10  ;;  %573 = vmatprep.subr.bf16.mxu1 %v709_v16 }
  0x3f   :  { %552 = vmatpush3.bf16.msra.mxu0 %v599_v10  ;;  %574 = vmatpush3.bf16.msra.mxu1 %v610_v21 }
  0x40   :  { %553 = vmatprep.subr.bf16.mxu0 %v600_v11  ;;  %575 = vmatprep.subr.bf16.mxu1 %v709_v16 }
  0x43   :  { %554 = vmatpush3.bf16.msra.mxu0 %v600_v11  ;;  %576 = vmatpush3.bf16.msra.mxu1 %v611_v22 }
  0x44   :  { %577 = vmatprep.subr.bf16.mxu1 %v709_v16 }
  0x46   :  { %556 = vmatmul.mubr.bf16.vlgmr.msra.gmra.mxu0 %v602_v12 }
  0x47   :  { %559 = vmatprep.mubr.bf16.mxu0 %v603_v13  ;;  %578 = vmatpush3.bf16.msra.mxu1 %v612_v23 }
  0x4e   :  { %560 = vmatmul.mubr.bf16.gmra.mxu0 %v604_v14 }
 0x106   :  { %v557_v25 = vpop.f32.mrf.mxu0 }
 0x107   :  { %v226_v26 = vadd.f32 %v557_v25, %v494_v24 }
 0x108   :  { %v217_v27 = vpop.f32.mrf.mxu0 }
 0x109   :  { %v250_v28 = vmax.f32 %v226_v26, 0.0  ;;  %v218_v29 = vadd.f32 %v494_v24, %v217_v27 }
 0x10a   :  { %v558_v30 = vpop.f32.mrf.mxu0 }
 0x10b   :  { %v269_v31 = vrot.slane %v250_v28, 4  ;;  %v248_v32 = vmax.f32 %v218_v29, 0.0  ;;  %v229_v33 = vadd.f32 %v558_v30, %v494_v24 }
 0x10c   :  { %v220_v34 = vpop.f32.mrf.mxu0 }
 0x10d   :  { %v270_v35 = vadd.f32 %v269_v31, %v250_v28  ;;  %v257_v36 = vrot.slane %v248_v32, 4  ;;  %v251_v37 = vmax.f32 %v229_v33, 0.0  ;;  %v221_v38 = vadd.f32 %v494_v24, %v220_v34 }
 0x10e   :  { %v561_v39 = vpop.f32.mrf.mxu0 }
 0x10f   :  { %v258_v40 = vadd.f32 %v257_v36, %v248_v32  ;;  %v275_v41 = vrot.slane %v251_v37, 4  ;;  %v249_v42 = vmax.f32 %v221_v38, 0.0  ;;  %v242_v43 = vadd.f32 %v561_v39, %v494_v24  ;;  %v507_v32 = vld [vmem:[%s798_s6] ss:$0 sm:$0xff] }
 0x110   :  { %v233_v44 = vpop.f32.mrf.mxu0  ;;  %v271_v45 = vrot.slane %v270_v35, 2 }
 0x111   :  { %v259_v46 = vrot.slane %v258_v40, 2  ;;  %v276_v47 = vadd.f32 %v275_v41, %v251_v37  ;;  %v263_v48 = vrot.slane %v249_v42, 4  ;;  %v254_v49 = vmax.f32 %v242_v43, 0.0 }
 0x112   :  { %v234_v50 = vadd.f32 %v494_v24, %v233_v44  ;;  %v562_v51 = vpop.f32.mrf.mxu0  ;;  %v272_v58 = vadd.f32 %v271_v45, %v270_v35  ;;  %v339_v35 = vpop.permute.xlu0 %338 }
 0x113   :  { %v260_v52 = vadd.f32 %v259_v46, %v258_v40  ;;  %v264_v53 = vadd.f32 %v263_v48, %v249_v42  ;;  %v293_v54 = vrot.slane %v254_v49, 4  ;;  %v245_v56 = vadd.f32 %v562_v51, %v494_v24 }
 0x114   :  { %v252_v55 = vmax.f32 %v234_v50, 0.0  ;;  %v236_v57 = vpop.f32.mrf.mxu0  ;;  %v277_v59 = vrot.slane %v276_v47, 2  ;;  %v273_v6 = vrot.slane %v272_v58, 1  ;;  %v347_v37 = vmul.f32 %v507_v32, %v339_v35 }
 0x115   :  { %v265_v60 = vrot.slane %v264_v53, 2  ;;  %v294_v61 = vadd.f32 %v293_v54, %v254_v49  ;;  %v255_v63 = vmax.f32 %v245_v56, 0.0  ;;  %v237_v0 = vadd.f32 %v494_v24, %v236_v57  ;;  %v474_v56 = vld [vmem:[%s795_s3] sm:$0xf] }
 0x116   :  { %v281_v62 = vrot.slane %v252_v55, 4  ;;  %v261_v1 = vrot.slane %v260_v52, 1  ;;  %v278_v7 = vadd.f32 %v277_v59, %v276_v47  ;;  %v274_v20 = vadd.f32 %v273_v6, %v272_v58  ;;  %v353_v44 = vpop.permute.xlu0 %352  ;;  %v508_v47 = vld [vmem:[%s800_s8] ss:$0 sm:$0xff]  ;;  %s677_s8 = scalar_lea.vmem %s485_s11, 128 }
 0x117   :  { %v266_v2 = vadd.f32 %v265_v60, %v264_v53  ;;  %v299_v4 = vrot.slane %v255_v63, 4  ;;  %v253_v5 = vmax.f32 %v237_v0, 0.0  ;;  %v295_v9 = vrot.slane %v294_v61, 2  ;;  %p678_p1 = scmp.ne.s32.totalorder %s485_s11, %s677_s8  ;;  %p683_p3 = scmp.lt.s32.totalorder %s677_s8, %s677_s8 }
 0x118   :  { %v282_v3 = vadd.f32 %v281_v62, %v252_v55  ;;  %v262_v13 = vadd.f32 %v261_v1, %v260_v52  ;;  %v279_v18 = vrot.slane %v278_v7, 1  ;;  %v475_v57 = vunpack.c.l.bf16 %v474_v56 }
 0x119   :  { %v267_v8 = vrot.slane %v266_v2, 1  ;;  %v300_v11 = vadd.f32 %v299_v4, %v255_v63  ;;  %v287_v12 = vrot.slane %v253_v5, 4  ;;  %v296_v21 = vadd.f32 %v295_v9, %v294_v61  ;;  %p684_p4 = por %p683_p3, %p682_p2 }
 0x11a   :  { %v283_v10 = vrot.slane %v282_v3, 2  ;;  %v280_v26 = vadd.f32 %v279_v18, %v278_v7 }
 0x11b   :  { %v268_v14 = vadd.f32 %v267_v8, %v266_v2  ;;  %v301_v16 = vrot.slane %v300_v11, 2  ;;  %v288_v17 = vadd.f32 %v287_v12, %v253_v5  ;;  %v297_v28 = vrot.slane %v296_v21, 1  ;;  %p685_p5 = pnand %p684_p4, %p678_p1 }
 0x11c   :  { %v284_v15 = vadd.f32 %v283_v10, %v282_v3 }
 0x11d   :  { %v314_v19 = vsel %vm313_vm1, %v268_v14, %v262_v13  ;;  %v302_v23 = vadd.f32 %v301_v16, %v300_v11  ;;  %v289_v24 = vrot.slane %v288_v17, 2  ;;  %v298_v36 = vadd.f32 %v297_v28, %v296_v21 }
 0x11e   :  { %v285_v22 = vrot.slane %v284_v15, 1  ;;  %v316_v25 = vsel %vm315_vm2, %v274_v20, %v314_v19 }
 0x11f   :  { %v290_v27 = vadd.f32 %v289_v24, %v288_v17  ;;  %v303_v30 = vrot.slane %v302_v23, 1  ;;  %v318_v33 = vsel %vm317_vm3, %v280_v26, %v316_v25 }
 0x120   :  { %v286_v29 = vadd.f32 %v285_v22, %v284_v15 }
 0x121   :  { %v291_v31 = vrot.slane %v290_v27, 1  ;;  %v304_v39 = vadd.f32 %v303_v30, %v302_v23 }
 0x122   :  { %v320_v38 = vsel %vm319_vm4, %v286_v29, %v318_v33 }
 0x123   :  { %v292_v34 = vadd.f32 %v291_v31, %v290_v27 }
 0x125   :  { %v322_v40 = vsel %vm321_vm5, %v292_v34, %v320_v38 }
 0x126   :  { %v324_v41 = vsel %vm323_vm6, %v298_v36, %v322_v40 }
 0x127   :  { %v326_v42 = vsel %vm325_vm7, %v304_v39, %v324_v41 }
 0x128   :  { %v348_v43 = vsub.f32 %v326_v42, %v347_v37 }
 0x12a   :  { %v355_v45 = vmul.f32 %v353_v44, %v348_v43 }
 0x12c   :  { %v356_v46 = vpack.c.bf16 %v355_v45, %v355_v45 }
 0x12e   :  { %580 = vmatmul.mubr.bf16.vlgmr.msra.gmra.mxu1 %v356_v46 }
 0x1ee   :  { %v462_v48 = vpop.f32.mrf.mxu1 }
 0x1ef   :  { %v463_v49 = vadd.f32 %v508_v47, %v462_v48 }
 0x1f0   :  { %v581_v50 = vpop.f32.mrf.mxu1 }
 0x1f1   :  { %v517_v51 = vmul.f32 -1.442695, %v463_v49 }
 0x1f2   :  { %v465_v52 = vpop.f32.mrf.mxu1 }
 0x1f3   :  { %613 = vpow2.f32 %v517_v51 }
 0x1f4   :  { %v582_v53 = vpop.f32.mrf.mxu1 }
 0x200   :  { %v614_v54 = vpop.eup %613 }
 0x201   :  { %v471_v55 = vadd.f32 1.0, %v614_v54 }
 0x203   :  { %615 = vrcp.f32 %v471_v55 }
 0x210   :  { %v616_v58 = vpop.eup %615 }
 0x211   :  { %v476_v59 = vmul.f32 %v616_v58, %v475_v57 }
 0x213   :  { %477 = vst [vmem:[#allocation9] sm:$0xff] %v476_v59 }
 0x214   :  { %688 = shalt.err (!%p685_p5)
}
 0x215   :  { %487 = dma.vmem_to_hbm [thread:$0]  %s485_s11, 128, %s801_s9, [#allocation5]  }
 0x216   :  { %701 = dma.done.wait [#allocation5], 128  }
 0x217   :  { %702 = vsyncadd [#allocation5], 4294967168 }
 0x218   :  { %491 = vsyncpa [#allocation4], 1 }
 0x219   :  { %492 = vsyncpa [#allocation7], 1 }
 0x21a   :  { %493 = vsyncpa [#allocation5], 1 }

// kernel: tpu_custom_call.1
= control target key start
LH: loop header
LB: loop body
LE: loop exit
PB: predicated region body
PF: predicated region fallthrough
CT: control target
= control target key end

     0   :  { %14 = vsyncpa [#allocation4], 0  ;;  %s792_s0 = inlined_call_operand.hbm [shape: bf16[8,8,128], index: 0, kind: input, shape index: {}]   ;;  %s793_s1 = inlined_call_operand.vmem [shape: f32[8,1], index: 1, kind: input, shape index: {}]   ;;  %s794_s2 = inlined_call_operand.vmem [shape: f32[8,1], index: 2, kind: input, shape index: {}]   ;;  %s795_s3 = inlined_call_operand.vmem [shape: bf16[8,128], index: 3, kind: input, shape index: {}]   ;;  %s796_s4 = inlined_call_operand.hbm [shape: bf16[128,128], index: 4, kind: input, shape index: {}]   ;;  %s797_s5 = inlined_call_operand.vmem [shape: f32[1,128], index: 5, kind: input, shape index: {}]   ;;  %s798_s6 = inlined_call_operand.vmem [shape: f32[1,128], index: 6, kind: input, shape index: {}]   ;;  %s799_s7 = inlined_call_operand.hbm [shape: bf16[128,128], index: 7, kind: input, shape index: {}]   ;;  %s800_s8 = inlined_call_operand.vmem [shape: f32[1,128], index: 8, kind: input, shape index: {}]   ;;  %s801_s9 = inlined_call_operand.hbm [shape: f32[8,128], index: 9, kind: output, shape index: {}]  }
   0x1   :  { %15 = vsyncpa [#allocation7], 0 }
   0x2   :  { %16 = vsyncpa [#allocation5], 0  ;;  %s703_s30 = smov [#allocation6]   ;;  %s704_s11 = smov [#allocation3]  }
   0x3   :  { %s40_s10 = sshll.u32 %s703_s30, 4  ;;  %s22_s12 = sshll.u32 %s704_s11, 4  ;;  %s41_s10 = int_to_ptr.vmem [resolvable:$true] %s40_s10  ;;  %s23_s12 = int_to_ptr.vmem [resolvable:$true] %s22_s12 }
   0x4   :  { %s625_s13 = scalar_lea.vmem %s41_s10, 1024  ;;  %p630_p1 = scmp.lt.s32.totalorder %s41_s10, %s41_s10 }
   0x5   :  { %p626_p0 = scmp.ne.s32.totalorder %s41_s10, %s625_s13  ;;  %p631_p2 = scmp.lt.s32.totalorder %s625_s13, %s625_s13 }
   0x7   :  { %p632_p3 = por %p631_p2, %p630_p1 }
   0x9   :  { %p633_p4 = pnand %p632_p3, %p626_p0 }
   0xb   :  { %636 = shalt.err (!%p633_p4)
}
   0xc   :  { %s705_s14 = smov 64   ;;  %s706_s15 = smov 4  }
   0xd   :  { %46 = dma.hbm_to_vmem [thread:$0]  %s796_s4, 1024, %s41_s10, [#allocation7], %s705_s14, %s705_s14, %s706_s15  }
   0xe   :  { %s645_s18 = scalar_lea.vmem %s23_s12, 512  ;;  %p650_p6 = scmp.lt.s32.totalorder %s23_s12, %s23_s12 }
   0xf   :  { %p646_p5 = scmp.ne.s32.totalorder %s23_s12, %s645_s18  ;;  %p651_p7 = scmp.lt.s32.totalorder %s645_s18, %s645_s18 }
  0x11   :  { %p652_p8 = por %p651_p7, %p650_p6 }
  0x13   :  { %p653_p9 = pnand %p652_p8, %p646_p5 }
  0x15   :  { %656 = shalt.err (!%p653_p9)
}
  0x16   :  { %28 = dma.hbm_to_vmem [thread:$0]  %s792_s0, 512, %s23_s12, [#allocation4], %s705_s14, %s705_s14, %s706_s15  }
  0x17   :  { %s707_s21 = smov [#allocation8]  }
  0x18   :  { %s56_s22 = sshll.u32 %s707_s21, 4  ;;  %s57_s22 = int_to_ptr.vmem [resolvable:$true] %s56_s22 }
  0x19   :  { %s665_s23 = scalar_lea.vmem %s57_s22, 1024  ;;  %p670_p11 = scmp.lt.s32.totalorder %s57_s22, %s57_s22 }
  0x1a   :  { %p666_p10 = scmp.ne.s32.totalorder %s57_s22, %s665_s23  ;;  %p671_p12 = scmp.lt.s32.totalorder %s665_s23, %s665_s23 }
  0x1c   :  { %p672_p13 = por %p671_p12, %p670_p11 }
  0x1e   :  { %p673_p0 = pnand %p672_p13, %p666_p10 }
  0x20   :  { %676 = shalt.err (!%p673_p0)
}
  0x21   :  { %62 = dma.hbm_to_vmem [thread:$0]  %s799_s7, 1024, %s57_s22, [#allocation7], %s705_s14, %s705_s14, %s706_s15  }
  0x22   :  { %697 = dma.done.wait [#allocation4], 512  }
  0x23   :  { %698 = vsyncadd [#allocation4], 4294966784 }
  0x24   :  { %699 = dma.done.wait [#allocation7], 2048  }
  0x25   :  { %700 = vsyncadd [#allocation7], 4294965248  ;;  %v708_v0 = vmov 0   ;;  %v593_v1 = vld [vmem:[#allocation6 + $0x38] sm:$0xff]   ;;  %v594_v2 = vld [vmem:[#allocation6 + $0x30] sm:$0xff]   ;;  %v709_v16 = vmov 0.0  }
  0x26   :  { %592 = vset.pattern.permute.xlu0 %v708_v0  ;;  %539 = vmatprep.subr.bf16.mxu0 %v593_v1  ;;  %v595_v3 = vld [vmem:[#allocation6 + $0x28] sm:$0xff]   ;;  %v596_v4 = vld [vmem:[#allocation6 + $0x20] sm:$0xff]   ;;  %v597_v6 = vld [vmem:[#allocation6 + $0x18] sm:$0xff]   ;;  %vm710_vm0 = vmmov 0   ;;  %vm313_vm1 = vcmask 1041409   ;;  %vm315_vm2 = vcmask 1042434  }
  0x27   :  { %540 = vmatpush3.bf16.msra.mxu0 %v593_v1  ;;  %v601_v5 = vld [vmem:[#allocation3] sm:$0xff]   ;;  %v598_v9 = vld [vmem:[#allocation6 + $0x10] sm:$0xff]   ;;  %v599_v10 = vld [vmem:[#allocation6 + $0x8] sm:$0xff]   ;;  %563 = vmatprep.subr.bf16.mxu1 %v709_v16  ;;  %vm317_vm3 = vcmask 1043459   ;;  %vm319_vm4 = vcmask 1044484   ;;  %vm321_vm5 = vcmask 1045509  }
  0x28   :  { %541 = vmatprep.subr.bf16.mxu0 %v594_v2  ;;  %555 = vmatprep.mubr.bf16.mxu0 %v601_v5  ;;  %v334_v7 = vld [vmem:[%s794_s2] sm:$0xff]  ;;  %v602_v12 = vld [vmem:[#allocation3 + $0x8] sm:$0xff]   ;;  %v603_v13 = vld [vmem:[#allocation3 + $0x10] sm:$0xff]   ;;  %vm323_vm6 = vcmask 1046534   ;;  %vm325_vm7 = vcmask 1047559   ;;  %s711_s10 = smov [#allocation9]  }
  0x29   :  { %v349_v8 = vld [vmem:[%s793_s1] sm:$0xff]  ;;  %338 = vperm.xlu0 %592, %v334_v7   ;;  %v604_v14 = vld [vmem:[#allocation3 + $0x18] sm:$0xff]   ;;  %v606_v17 = vld [vmem:[#allocation8 + $0x30] sm:$0xff]   ;;  %579 = vmatprep.mubr.msk.bf16.mxu1 %vm710_vm0, %v709_v16  ;;  %s484_s11 = sshll.u32 %s711_s10, 4  ;;  %s485_s11 = int_to_ptr.vmem [resolvable:$true] %s484_s11 }
  0x2a   :  { %v600_v11 = vld [vmem:[#allocation6] sm:$0xff]   ;;  %v605_v15 = vld [vmem:[#allocation8 + $0x38] sm:$0xff]   ;;  %v607_v18 = vld [vmem:[#allocation8 + $0x28] sm:$0xff]   ;;  %p682_p2 = scmp.lt.s32.totalorder %s485_s11, %s485_s11 }
  0x2b   :  { %542 = vmatpush3.bf16.msra.mxu0 %v594_v2  ;;  %564 = vmatpush3.bf16.msra.mxu1 %v605_v15  ;;  %v608_v19 = vld [vmem:[#allocation8 + $0x20] sm:$0xff]   ;;  %v609_v20 = vld [vmem:[#allocation8 + $0x18] sm:$0xff]   ;;  %v610_v21 = vld [vmem:[#allocation8 + $0x10] sm:$0xff]  }
  0x2c   :  { %543 = vmatprep.subr.bf16.mxu0 %v595_v3  ;;  %565 = vmatprep.subr.bf16.mxu1 %v709_v16  ;;  %v611_v22 = vld [vmem:[#allocation8 + $0x8] sm:$0xff]   ;;  %v612_v23 = vld [vmem:[#allocation8] sm:$0xff]  }
  0x2d   :  { %352 = vperm.xlu0 %592, %v349_v8   ;;  %v494_v24 = vld [vmem:[%s797_s5] ss:$0 sm:$0xff] }
  0x2f   :  { %544 = vmatpush3.bf16.msra.mxu0 %v595_v3  ;;  %566 = vmatpush3.bf16.msra.mxu1 %v606_v17 }
  0x30   :  { %545 = vmatprep.subr.bf16.mxu0 %v596_v4  ;;  %567 = vmatprep.subr.bf16.mxu1 %v709_v16 }
  0x33   :  { %546 = vmatpush3.bf16.msra.mxu0 %v596_v4  ;;  %568 = vmatpush3.bf16.msra.mxu1 %v607_v18 }
  0x34   :  { %547 = vmatprep.subr.bf16.mxu0 %v597_v6  ;;  %569 = vmatprep.subr.bf16.mxu1 %v709_v16 }
  0x37   :  { %548 = vmatpush3.bf16.msra.mxu0 %v597_v6  ;;  %570 = vmatpush3.bf16.msra.mxu1 %v608_v19 }
  0x38   :  { %549 = vmatprep.subr.bf16.mxu0 %v598_v9  ;;  %571 = vmatprep.subr.bf16.mxu1 %v709_v16 }
  0x3b   :  { %550 = vmatpush3.bf16.msra.mxu0 %v598_v9  ;;  %572 = vmatpush3.bf16.msra.mxu1 %v609_v20 }
  0x3c   :  { %551 = vmatprep.subr.bf16.mxu0 %v599_v10  ;;  %573 = vmatprep.subr.bf16.mxu1 %v709_v16 }
  0x3f   :  { %552 = vmatpush3.bf16.msra.mxu0 %v599_v10  ;;  %574 = vmatpush3.bf16.msra.mxu1 %v610_v21 }
  0x40   :  { %553 = vmatprep.subr.bf16.mxu0 %v600_v11  ;;  %575 = vmatprep.subr.bf16.mxu1 %v709_v16 }
  0x43   :  { %554 = vmatpush3.bf16.msra.mxu0 %v600_v11  ;;  %576 = vmatpush3.bf16.msra.mxu1 %v611_v22 }
  0x44   :  { %577 = vmatprep.subr.bf16.mxu1 %v709_v16 }
  0x46   :  { %556 = vmatmul.mubr.bf16.vlgmr.msra.gmra.mxu0 %v602_v12 }
  0x47   :  { %559 = vmatprep.mubr.bf16.mxu0 %v603_v13  ;;  %578 = vmatpush3.bf16.msra.mxu1 %v612_v23 }
  0x4e   :  { %560 = vmatmul.mubr.bf16.gmra.mxu0 %v604_v14 }
 0x106   :  { %v557_v25 = vpop.f32.mrf.mxu0 }
 0x107   :  { %v226_v26 = vadd.f32 %v557_v25, %v494_v24 }
 0x108   :  { %v217_v27 = vpop.f32.mrf.mxu0 }
 0x109   :  { %v250_v28 = vmax.f32 %v226_v26, 0.0  ;;  %v218_v29 = vadd.f32 %v494_v24, %v217_v27 }
 0x10a   :  { %v558_v30 = vpop.f32.mrf.mxu0 }
 0x10b   :  { %v269_v31 = vrot.slane %v250_v28, 4  ;;  %v248_v32 = vmax.f32 %v218_v29, 0.0  ;;  %v229_v33 = vadd.f32 %v558_v30, %v494_v24 }
 0x10c   :  { %v220_v34 = vpop.f32.mrf.mxu0 }
 0x10d   :  { %v270_v35 = vadd.f32 %v269_v31, %v250_v28  ;;  %v257_v36 = vrot.slane %v248_v32, 4  ;;  %v251_v37 = vmax.f32 %v229_v33, 0.0  ;;  %v221_v38 = vadd.f32 %v494_v24, %v220_v34 }
 0x10e   :  { %v561_v39 = vpop.f32.mrf.mxu0 }
 0x10f   :  { %v258_v40 = vadd.f32 %v257_v36, %v248_v32  ;;  %v275_v41 = vrot.slane %v251_v37, 4  ;;  %v249_v42 = vmax.f32 %v221_v38, 0.0  ;;  %v242_v43 = vadd.f32 %v561_v39, %v494_v24  ;;  %v507_v32 = vld [vmem:[%s798_s6] ss:$0 sm:$0xff] }
 0x110   :  { %v233_v44 = vpop.f32.mrf.mxu0  ;;  %v271_v45 = vrot.slane %v270_v35, 2 }
 0x111   :  { %v259_v46 = vrot.slane %v258_v40, 2  ;;  %v276_v47 = vadd.f32 %v275_v41, %v251_v37  ;;  %v263_v48 = vrot.slane %v249_v42, 4  ;;  %v254_v49 = vmax.f32 %v242_v43, 0.0 }
 0x112   :  { %v234_v50 = vadd.f32 %v494_v24, %v233_v44  ;;  %v562_v51 = vpop.f32.mrf.mxu0  ;;  %v272_v58 = vadd.f32 %v271_v45, %v270_v35  ;;  %v339_v35 = vpop.permute.xlu0 %338 }
 0x113   :  { %v260_v52 = vadd.f32 %v259_v46, %v258_v40  ;;  %v264_v53 = vadd.f32 %v263_v48, %v249_v42  ;;  %v293_v54 = vrot.slane %v254_v49, 4  ;;  %v245_v56 = vadd.f32 %v562_v51, %v494_v24 }
 0x114   :  { %v252_v55 = vmax.f32 %v234_v50, 0.0  ;;  %v236_v57 = vpop.f32.mrf.mxu0  ;;  %v277_v59 = vrot.slane %v276_v47, 2  ;;  %v273_v6 = vrot.slane %v272_v58, 1  ;;  %v347_v37 = vmul.f32 %v507_v32, %v339_v35 }
 0x115   :  { %v265_v60 = vrot.slane %v264_v53, 2  ;;  %v294_v61 = vadd.f32 %v293_v54, %v254_v49  ;;  %v255_v63 = vmax.f32 %v245_v56, 0.0  ;;  %v237_v0 = vadd.f32 %v494_v24, %v236_v57  ;;  %v474_v56 = vld [vmem:[%s795_s3] sm:$0xf] }
 0x116   :  { %v281_v62 = vrot.slane %v252_v55, 4  ;;  %v261_v1 = vrot.slane %v260_v52, 1  ;;  %v278_v7 = vadd.f32 %v277_v59, %v276_v47  ;;  %v274_v20 = vadd.f32 %v273_v6, %v272_v58  ;;  %v353_v44 = vpop.permute.xlu0 %352  ;;  %v508_v47 = vld [vmem:[%s800_s8] ss:$0 sm:$0xff]  ;;  %s677_s8 = scalar_lea.vmem %s485_s11, 128 }
 0x117   :  { %v266_v2 = vadd.f32 %v265_v60, %v264_v53  ;;  %v299_v4 = vrot.slane %v255_v63, 4  ;;  %v253_v5 = vmax.f32 %v237_v0, 0.0  ;;  %v295_v9 = vrot.slane %v294_v61, 2  ;;  %p678_p1 = scmp.ne.s32.totalorder %s485_s11, %s677_s8  ;;  %p683_p3 = scmp.lt.s32.totalorder %s677_s8, %s677_s8 }
 0x118   :  { %v282_v3 = vadd.f32 %v281_v62, %v252_v55  ;;  %v262_v13 = vadd.f32 %v261_v1, %v260_v52  ;;  %v279_v18 = vrot.slane %v278_v7, 1  ;;  %v475_v57 = vunpack.c.l.bf16 %v474_v56 }
 0x119   :  { %v267_v8 = vrot.slane %v266_v2, 1  ;;  %v300_v11 = vadd.f32 %v299_v4, %v255_v63  ;;  %v287_v12 = vrot.slane %v253_v5, 4  ;;  %v296_v21 = vadd.f32 %v295_v9, %v294_v61  ;;  %p684_p4 = por %p683_p3, %p682_p2 }
 0x11a   :  { %v283_v10 = vrot.slane %v282_v3, 2  ;;  %v280_v26 = vadd.f32 %v279_v18, %v278_v7 }
 0x11b   :  { %v268_v14 = vadd.f32 %v267_v8, %v266_v2  ;;  %v301_v16 = vrot.slane %v300_v11, 2  ;;  %v288_v17 = vadd.f32 %v287_v12, %v253_v5  ;;  %v297_v28 = vrot.slane %v296_v21, 1  ;;  %p685_p5 = pnand %p684_p4, %p678_p1 }
 0x11c   :  { %v284_v15 = vadd.f32 %v283_v10, %v282_v3 }
 0x11d   :  { %v314_v19 = vsel %vm313_vm1, %v268_v14, %v262_v13  ;;  %v302_v23 = vadd.f32 %v301_v16, %v300_v11  ;;  %v289_v24 = vrot.slane %v288_v17, 2  ;;  %v298_v36 = vadd.f32 %v297_v28, %v296_v21 }
 0x11e   :  { %v285_v22 = vrot.slane %v284_v15, 1  ;;  %v316_v25 = vsel %vm315_vm2, %v274_v20, %v314_v19 }
 0x11f   :  { %v290_v27 = vadd.f32 %v289_v24, %v288_v17  ;;  %v303_v30 = vrot.slane %v302_v23, 1  ;;  %v318_v33 = vsel %vm317_vm3, %v280_v26, %v316_v25 }
 0x120   :  { %v286_v29 = vadd.f32 %v285_v22, %v284_v15 }
 0x121   :  { %v291_v31 = vrot.slane %v290_v27, 1  ;;  %v304_v39 = vadd.f32 %v303_v30, %v302_v23 }
 0x122   :  { %v320_v38 = vsel %vm319_vm4, %v286_v29, %v318_v33 }
 0x123   :  { %v292_v34 = vadd.f32 %v291_v31, %v290_v27 }
 0x125   :  { %v322_v40 = vsel %vm321_vm5, %v292_v34, %v320_v38 }
 0x126   :  { %v324_v41 = vsel %vm323_vm6, %v298_v36, %v322_v40 }
 0x127   :  { %v326_v42 = vsel %vm325_vm7, %v304_v39, %v324_v41 }
 0x128   :  { %v348_v43 = vsub.f32 %v326_v42, %v347_v37 }
 0x12a   :  { %v355_v45 = vmul.f32 %v353_v44, %v348_v43 }
 0x12c   :  { %v356_v46 = vpack.c.bf16 %v355_v45, %v355_v45 }
 0x12e   :  { %580 = vmatmul.mubr.bf16.vlgmr.msra.gmra.mxu1 %v356_v46 }
 0x1ee   :  { %v462_v48 = vpop.f32.mrf.mxu1 }
 0x1ef   :  { %v463_v49 = vadd.f32 %v508_v47, %v462_v48 }
 0x1f0   :  { %v581_v50 = vpop.f32.mrf.mxu1 }
 0x1f1   :  { %v517_v51 = vmul.f32 -1.442695, %v463_v49 }
 0x1f2   :  { %v465_v52 = vpop.f32.mrf.mxu1 }
 0x1f3   :  { %613 = vpow2.f32 %v517_v51 }
 0x1f4   :  { %v582_v53 = vpop.f32.mrf.mxu1 }
 0x200   :  { %v614_v54 = vpop.eup %613 }
 0x201   :  { %v471_v55 = vadd.f32 1.0, %v614_v54 }
 0x203   :  { %615 = vrcp.f32 %v471_v55 }
 0x210   :  { %v616_v58 = vpop.eup %615 }
 0x211   :  { %v476_v59 = vmul.f32 %v616_v58, %v475_v57 }
 0x213   :  { %477 = vst [vmem:[#allocation9] sm:$0xff] %v476_v59 }
 0x214   :  { %688 = shalt.err (!%p685_p5)
}
 0x215   :  { %487 = dma.vmem_to_hbm [thread:$0]  %s485_s11, 128, %s801_s9, [#allocation5]  }
 0x216   :  { %701 = dma.done.wait [#allocation5], 128  }
 0x217   :  { %702 = vsyncadd [#allocation5], 4294967168 }
 0x218   :  { %491 = vsyncpa [#allocation4], 1 }
 0x219   :  { %492 = vsyncpa [#allocation7], 1 }
 0x21a   :  { %493 = vsyncpa [#allocation5], 1 }

</bundles_post_ra>
